<compile_context>
chip_gen: v6e
topology: v6e:2x2x1
jax: 0.10.0
libtpu: 0.0.40
codegen_flags: <defaults>
</compile_context>

<pallas_src>
import functools

import jax
import jax.numpy as jnp
from jax.experimental import pallas as pl
from jax.experimental.pallas import tpu as pltpu

LANE = 128  # TPU vreg lane width


def _round_up(x, m):
    return (x + m - 1) // m * m


def _vmem_budget_bytes():
    """Generation-aware scoped-VMEM budget (~75% of per-TC capacity, capped)."""
    try:
        cap = int(pltpu.get_tpu_info().vmem_capacity_bytes)
    except Exception:
        cap = 64 << 20  # conservative fallback (v7x per-TC)
    return int(min(100 << 20, 0.75 * cap))


def _pick_tile_m(b_p, cap_rows):
    tm = min(1024, b_p, cap_rows)
    # v7x has 2 TensorCores: keep >= 2 grid steps on the parallel axis when the
    # batch is big enough to split.
    if b_p >= 512:
        tm = min(tm, _round_up(pl.cdiv(b_p, 2), 256))
    if tm >= 256:
        tm = (tm // 256) * 256          # MXU-friendly on v6e/v7x, 128-mult for v5e
    else:
        tm = max(8, (tm // 8) * 8)
    return tm


def _pad_cast(a, rows, cols, dtype):
    """Zero-pad to (rows, cols) and cast; pass-through when already aligned."""
    if a.shape == (rows, cols):
        return a.astype(dtype)
    out = jnp.zeros((rows, cols), dtype)
    return out.at[: a.shape[0], : a.shape[1]].set(a.astype(dtype))


def _disc_kernel(
    data_ref, nvec_ref,
    wenc_ref, benc_ref, w2_ref, b2_ref, wd_ref, bd_ref,
    out_ref, pred_ref,
    z_ref,
    *, h_p, vd_p,
):
    j = pl.program_id(1)

    # Encoder + dis head run once per batch tile (j == 0); z is cached in VMEM.
    @pl.when(j == 0)
    def _():
        x = data_ref[...]                                    # bf16 [TM, nb_p]
        enc = jnp.dot(x, wenc_ref[...],
                      preferred_element_type=jnp.float32) + benc_ref[...]
        h = jnp.maximum(enc[:, :h_p], 0.0)                   # ReLU(Linear1)
        mean = enc[:, h_p:h_p + vd_p]
        logstd = enc[:, h_p + vd_p:h_p + 2 * vd_p]
        logits = jnp.dot(h.astype(jnp.bfloat16), w2_ref[...],
                         preferred_element_type=jnp.float32) + b2_ref[...]
        # Sigmoid via EUP reciprocal; only column 0 of the padded logits is real.
        out_ref[...] = pl.reciprocal(
            1.0 + jnp.exp(-logits[:, :1]), approx=True).astype(out_ref.dtype)
        # f32 elementwise epilogue (EUP exp + VPU fma) -- keep f32 for v5e.
        z_ref[...] = jnp.exp(logstd) * nvec_ref[...] + mean

    # Decoder: only wd/bd/pred tiles stream on the inner ("arbitrary") axis.
    pred = jnp.dot(z_ref[...].astype(jnp.bfloat16), wd_ref[...],
                   preferred_element_type=jnp.float32) + bd_ref[...]
    pred_ref[...] = pred.astype(pred_ref.dtype)


def pack_params(params, nb_item, vector_dim):
    """Zero-pad to lane-dense shapes, fuse [w1 | wm | ws] into one encoder
    weight, cast matmul weights to bf16 (biases stay f32)."""
    nb_p = _round_up(nb_item, LANE)
    vd_p = _round_up(vector_dim, LANE)
    h_p = _round_up(32, LANE)   # dis hidden width 32 -> 128
    o_p = LANE                  # dis output width 1  -> 128 (only col 0 real)
    enc_w = h_p + 2 * vd_p

    wenc = jnp.zeros((nb_p, enc_w), jnp.float32)
    wenc = wenc.at[:nb_item, :32].set(params["w1"])
    wenc = wenc.at[:nb_item, h_p:h_p + vector_dim].set(params["wm"])
    wenc = wenc.at[:nb_item, h_p + vd_p:h_p + vd_p + vector_dim].set(params["ws"])
    benc = jnp.zeros((1, enc_w), jnp.float32)
    benc = benc.at[:, :32].set(params["b1"])
    benc = benc.at[:, h_p:h_p + vector_dim].set(params["bm"])
    benc = benc.at[:, h_p + vd_p:h_p + vd_p + vector_dim].set(params["bs"])

    w2 = jnp.zeros((h_p, o_p), jnp.float32).at[:32, :1].set(params["w2"])
    b2 = jnp.zeros((1, o_p), jnp.float32).at[:, :1].set(params["b2"])

    wd = jnp.zeros((vd_p, nb_p), jnp.float32).at[:vector_dim, :nb_item].set(params["wd"])
    bd = jnp.zeros((1, nb_p), jnp.float32).at[:, :nb_item].set(params["bd"])

    return dict(
        wenc=wenc.astype(jnp.bfloat16), benc=benc,
        w2=w2.astype(jnp.bfloat16), b2=b2,
        wd=wd.astype(jnp.bfloat16), bd=bd,
        nb_p=nb_p, vd_p=vd_p, h_p=h_p, o_p=o_p, enc_w=enc_w,
    )


def discriminator_forward(data, neg_vec, packed, *, tile_m=None):
    """data: [B, nb_item] f32, neg_vec: [B, vector_dim] f32.
    Returns (out [B, 1] f32, pred [B, nb_item] f32). Call under jax.jit so the
    pad/cast and un-pad slices fuse around the kernel."""
    B, nb_item = data.shape
    nb_p, vd_p, h_p, o_p, enc_w = (packed["nb_p"], packed["vd_p"], packed["h_p"],
                                   packed["o_p"], packed["enc_w"])

    # Item-dim tile for decoder weight / pred (inner, "arbitrary" grid axis).
    if nb_p <= 1024:
        tn = nb_p
    else:
        tn = next(c for c in (1024, 512, 256, 128) if nb_p % c == 0)

    B_p = _round_up(B, 8)

    # --- VMEM budgeting (generation-aware). Pallas double-buffers every input
    # BlockSpec (weights included), so count 2x everywhere.
    budget = _vmem_budget_bytes()
    weight_bytes = 2 * (
        2 * nb_p * enc_w + 4 * enc_w          # fused encoder weight (bf16) + bias (f32)
        + 2 * h_p * o_p + 4 * o_p             # w2 + b2
        + 2 * vd_p * tn + 4 * tn)             # decoder weight/bias block
    # per-row bytes: double-buffered data(bf16)+nvec(f32)+out(f32)+pred(f32), plus z scratch.
    row_bytes = 2 * (2 * nb_p + 4 * vd_p + 4 + 4 * tn) + 4 * vd_p
    avail = max(0, budget - weight_bytes - (4 << 20))
    cap_rows = max(8, avail // row_bytes)
    if tile_m is None:
        tile_m = _pick_tile_m(B_p, cap_rows)
    else:
        tile_m = max(8, (min(tile_m, B_p) // 8) * 8)
    vmem_limit = int(min(budget,
                         max(weight_bytes + tile_m * row_bytes + (4 << 20), 32 << 20)))

    # bf16 data stream is the dominant HBM read; nvec stays f32 for the epilogue.
    data_p = _pad_cast(data, B_p, nb_p, jnp.bfloat16)
    nvec_p = _pad_cast(neg_vec, B_p, vd_p, jnp.float32)

    # NOTE: a ragged last batch tile (B_p % tile_m != 0) reads unspecified rows;
    # exp() may produce inf/nan there, but those rows never survive the clipped
    # writeback, and the matmuls are strictly row-wise so valid rows are untouched.
    grid = (pl.cdiv(B_p, tile_m), pl.cdiv(nb_p, tn))

    row = lambda i, j: (i, 0)     # batch-tiled arrays, constant over the item axis
    const = lambda i, j: (0, 0)   # resident weights
    coln = lambda i, j: (0, j)    # decoder weight/bias: stream over the item axis

    in_specs = [
        pl.BlockSpec((tile_m, nb_p), row),      # data (bf16)
        pl.BlockSpec((tile_m, vd_p), row),      # neg_distribution_vector (f32)
        pl.BlockSpec((nb_p, enc_w), const),     # [w1 | wm | ws] fused
        pl.BlockSpec((1, enc_w), const),        # [b1 | bm | bs] fused
        pl.BlockSpec((h_p, o_p), const),        # w2
        pl.BlockSpec((1, o_p), const),          # b2
        pl.BlockSpec((vd_p, tn), coln),         # decoder w tile
        pl.BlockSpec((1, tn), coln),            # decoder b tile
    ]
    out_specs = (
        pl.BlockSpec((tile_m, 1), row),                   # out: the real 1-wide column
        pl.BlockSpec((tile_m, tn), lambda i, j: (i, j)),  # pred
    )
    out_shape = (
        jax.ShapeDtypeStruct((B_p, 1), jnp.float32),
        jax.ShapeDtypeStruct((B_p, nb_p), jnp.float32),
    )

    kernel = functools.partial(_disc_kernel, h_p=h_p, vd_p=vd_p)
    out_p, pred_p = pl.pallas_call(
        kernel,
        grid=grid,
        in_specs=in_specs,
        out_specs=out_specs,
        out_shape=out_shape,
        scratch_shapes=[pltpu.VMEM((tile_m, vd_p), jnp.float32)],  # z cache
        compiler_params=pltpu.CompilerParams(
            dimension_semantics=("parallel", "arbitrary"),
            vmem_limit_bytes=vmem_limit,
        ),
    )(
        data_p, nvec_p,
        packed["wenc"], packed["benc"], packed["w2"], packed["b2"],
        packed["wd"], packed["bd"],
    )

    # TODO(synk): for nb_item so large that the resident [nb_p, enc_w] encoder
    #             weight plus one data row-tile overflow the v7x budget, add a
    #             K-dim (item) tiling of the encoder matmul as a third grid axis.
    return out_p[:B, :], pred_p[:B, :nb_item]


def init_params(key, nb_item, neg_dis_size, vector_dim):
    """Parameter init mirroring the PyTorch module (distinct keys per tensor).

    nn.Linear default: U(-1/sqrt(fan_in), 1/sqrt(fan_in)) for weight and bias.
    mean_vector / std_vector / decoder weights re-initialized with N(0, 0.01);
    their biases keep the default uniform init. Weights stored as [in, out].
    """
    ks = jax.random.split(key, 12)

    def uni(k, shape, fan_in):
        bound = float(fan_in) ** -0.5
        return jax.random.uniform(k, shape, jnp.float32, -bound, bound)

    # dis head
    w1 = uni(ks[0], (nb_item, 32), nb_item)
    b1 = uni(ks[1], (1, 32), nb_item)
    w2 = uni(ks[2], (32, 1), 32)
    b2 = uni(ks[3], (1, 1), 32)
    # mean / std / decoder: weight ~ N(0, 0.01), bias default uniform.
    wm = 0.01 * jax.random.normal(ks[4], (neg_dis_size, vector_dim), jnp.float32)
    bm = uni(ks[5], (1, vector_dim), neg_dis_size)
    ws = 0.01 * jax.random.normal(ks[6], (neg_dis_size, vector_dim), jnp.float32)
    bs = uni(ks[7], (1, vector_dim), neg_dis_size)
    wd = 0.01 * jax.random.normal(ks[8], (vector_dim, nb_item), jnp.float32)
    bd = uni(ks[9], (1, nb_item), vector_dim)

    return dict(w1=w1, b1=b1, w2=w2, b2=b2,
                wm=wm, bm=bm, ws=ws, bs=bs, wd=wd, bd=bd)


if __name__ == "__main__":
    # In the module's forward, mean_vector/std_vector are applied to `data`
    # itself, so neg_dis_size must equal nb_item.
    B = 2
    nb_item = 64
    neg_dis_size = 64
    vector_dim = 32

    key = jax.random.PRNGKey(0)
    k_data, k_nvec, k_params = jax.random.split(key, 3)

    data = jax.random.uniform(k_data, (B, nb_item), jnp.float32)          # [2, 64]
    neg_vec = jax.random.normal(k_nvec, (B, vector_dim), jnp.float32)     # [2, 32]
    params = init_params(k_params, nb_item, neg_dis_size, vector_dim)
    packed = pack_params(params, nb_item, vector_dim)

    # jit so pad/cast and un-pad slices fuse with the kernel (no extra HBM passes).
    fwd = jax.jit(lambda d, nv: discriminator_forward(d, nv, packed))
    out, pred = fwd(data, neg_vec)
    jax.block_until_ready((out, pred))

    # Pure-JAX reference check (f32); kernel uses bf16 data/weights with f32
    # accumulation and an approx EUP reciprocal, so compare at bf16 tolerance.
    relu = lambda v: jnp.maximum(v, 0.0)
    h = relu(data @ params["w1"] + params["b1"])
    out_ref = jax.nn.sigmoid(h @ params["w2"] + params["b2"])
    z = jnp.exp(data @ params["ws"] + params["bs"]) * neg_vec \
        + (data @ params["wm"] + params["bm"])
    pred_ref = z @ params["wd"] + params["bd"]

    assert out.shape == (B, 1) and pred.shape == (B, nb_item)
    assert jnp.allclose(out, out_ref, atol=2e-2, rtol=2e-2)
    assert jnp.allclose(pred, pred_ref, atol=2e-2, rtol=2e-2)

    print("KERNEL_OK")
</pallas_src>

<mosaic_0001>
module attributes {stable_mosaic.version = 11 : i64} {
  func.func @_disc_kernel(%arg0: i32, %arg1: i32, %arg2: memref<8x128xbf16, #tpu.memory_space<vmem>>, %arg3: memref<8x128xf32, #tpu.memory_space<vmem>>, %arg4: memref<128x384xbf16, #tpu.memory_space<vmem>>, %arg5: memref<1x384xf32, #tpu.memory_space<vmem>>, %arg6: memref<128x128xbf16, #tpu.memory_space<vmem>>, %arg7: memref<1x128xf32, #tpu.memory_space<vmem>>, %arg8: memref<128x128xbf16, #tpu.memory_space<vmem>>, %arg9: memref<1x128xf32, #tpu.memory_space<vmem>>, %arg10: memref<8x1xf32, #tpu.memory_space<vmem>>, %arg11: memref<8x128xf32, #tpu.memory_space<vmem>>, %arg12: memref<8x128xf32, #tpu.memory_space<vmem>>) attributes {dimension_semantics = [#tpu.dimension_semantics<parallel>, #tpu.dimension_semantics<arbitrary>], iteration_bounds = array<i64: 1, 1>, scalar_prefetch = 0 : i64, scratch_operands = 1 : i64, tpu.core_type = #tpu.core_type<tc>, window_params = [{transform_indices = @transform_0, window_bounds = array<i64: 8, 128>}, {transform_indices = @transform_1, window_bounds = array<i64: 8, 128>}, {pipeline_mode = #tpu.pipeline_mode<synchronous>, transform_indices = @transform_2, window_bounds = array<i64: 128, 384>}, {pipeline_mode = #tpu.pipeline_mode<synchronous>, transform_indices = @transform_3, window_bounds = array<i64: 1, 384>}, {pipeline_mode = #tpu.pipeline_mode<synchronous>, transform_indices = @transform_4, window_bounds = array<i64: 128, 128>}, {pipeline_mode = #tpu.pipeline_mode<synchronous>, transform_indices = @transform_5, window_bounds = array<i64: 1, 128>}, {transform_indices = @transform_6, window_bounds = array<i64: 128, 128>}, {transform_indices = @transform_7, window_bounds = array<i64: 1, 128>}, {transform_indices = @transform_8, window_bounds = array<i64: 8, 1>}, {transform_indices = @transform_9, window_bounds = array<i64: 8, 128>}]} {
    %c0_i32 = arith.constant 0 : i32
    %0 = arith.cmpi eq, %arg1, %c0_i32 : i32
    %1 = arith.extui %0 : i1 to i32
    %c0_i32_0 = arith.constant 0 : i32
    %2 = arith.cmpi ne, %1, %c0_i32_0 : i32
    scf.if %2 {
      %c0_8 = arith.constant 0 : index
      %c0_9 = arith.constant 0 : index
      %11 = vector.load %arg2[%c0_8, %c0_9] : memref<8x128xbf16, #tpu.memory_space<vmem>>, vector<8x128xbf16>
      %c0_10 = arith.constant 0 : index
      %c0_11 = arith.constant 0 : index
      %12 = vector.load %arg4[%c0_10, %c0_11] : memref<128x384xbf16, #tpu.memory_space<vmem>>, vector<128x384xbf16>
      %cst_12 = arith.constant dense<0.000000e+00> : vector<8x384xf32>
      %13 = tpu.matmul %11, %12, %cst_12 {dimension_numbers = #tpu.dot_dimension_numbers<[1], [0], [0], [1], [0, 0, 1, 1], [], []>} : vector<8x128xbf16>, vector<128x384xbf16>, vector<8x384xf32> -> vector<8x384xf32>
      %c0_13 = arith.constant 0 : index
      %c0_14 = arith.constant 0 : index
      %14 = vector.load %arg5[%c0_13, %c0_14] : memref<1x384xf32, #tpu.memory_space<vmem>>, vector<1x384xf32>
      %15 = vector.broadcast %14 : vector<1x384xf32> to vector<8x384xf32>
      %16 = arith.addf %13, %15 : vector<8x384xf32>
      %17 = vector.extract_strided_slice %16 {offsets = [0, 0], sizes = [8, 128], strides = [1, 1]} : vector<8x384xf32> to vector<8x128xf32>
      %cst_15 = arith.constant 0.000000e+00 : f32
      %18 = vector.broadcast %cst_15 : f32 to vector<8x128xf32>
      %19 = arith.maximumf %17, %18 : vector<8x128xf32>
      %20 = vector.extract_strided_slice %16 {offsets = [0, 128], sizes = [8, 128], strides = [1, 1]} : vector<8x384xf32> to vector<8x128xf32>
      %21 = vector.extract_strided_slice %16 {offsets = [0, 256], sizes = [8, 128], strides = [1, 1]} : vector<8x384xf32> to vector<8x128xf32>
      %22 = arith.truncf %19 : vector<8x128xf32> to vector<8x128xbf16>
      %c0_16 = arith.constant 0 : index
      %c0_17 = arith.constant 0 : index
      %23 = vector.load %arg6[%c0_16, %c0_17] : memref<128x128xbf16, #tpu.memory_space<vmem>>, vector<128x128xbf16>
      %cst_18 = arith.constant dense<0.000000e+00> : vector<8x128xf32>
      %24 = tpu.matmul %22, %23, %cst_18 {dimension_numbers = #tpu.dot_dimension_numbers<[1], [0], [0], [1], [0, 0, 1, 1], [], []>} : vector<8x128xbf16>, vector<128x128xbf16>, vector<8x128xf32> -> vector<8x128xf32>
      %c0_19 = arith.constant 0 : index
      %c0_20 = arith.constant 0 : index
      %25 = vector.load %arg7[%c0_19, %c0_20] : memref<1x128xf32, #tpu.memory_space<vmem>>, vector<1x128xf32>
      %26 = vector.broadcast %25 : vector<1x128xf32> to vector<8x128xf32>
      %27 = arith.addf %24, %26 : vector<8x128xf32>
      %28 = vector.extract_strided_slice %27 {offsets = [0, 0], sizes = [8, 1], strides = [1, 1]} : vector<8x128xf32> to vector<8x1xf32>
      %cst_21 = arith.constant 0.000000e+00 : f32
      %29 = vector.broadcast %cst_21 : f32 to vector<8x1xf32>
      %30 = arith.subf %29, %28 : vector<8x1xf32>
      %31 = math.exp %30 : vector<8x1xf32>
      %cst_22 = arith.constant 1.000000e+00 : f32
      %32 = vector.broadcast %cst_22 : f32 to vector<8x1xf32>
      %33 = arith.addf %32, %31 : vector<8x1xf32>
      %34 = tpu.reciprocal %33 {approx = true} : vector<8x1xf32> -> vector<8x1xf32>
      %c0_23 = arith.constant 0 : index
      %c0_24 = arith.constant 0 : index
      %35 = vector.load %arg10[%c0_23, %c0_24] : memref<8x1xf32, #tpu.memory_space<vmem>>, vector<8x1xf32>
      tpu.vector_store %arg10[%c0_23, %c0_24], %34 {strides = array<i32>} : memref<8x1xf32, #tpu.memory_space<vmem>>, vector<8x1xf32>,
      %36 = math.exp %21 : vector<8x128xf32>
      %c0_25 = arith.constant 0 : index
      %c0_26 = arith.constant 0 : index
      %37 = vector.load %arg3[%c0_25, %c0_26] : memref<8x128xf32, #tpu.memory_space<vmem>>, vector<8x128xf32>
      %38 = arith.mulf %36, %37 : vector<8x128xf32>
      %39 = arith.addf %38, %20 : vector<8x128xf32>
      %c0_27 = arith.constant 0 : index
      %c0_28 = arith.constant 0 : index
      %40 = vector.load %arg12[%c0_27, %c0_28] : memref<8x128xf32, #tpu.memory_space<vmem>>, vector<8x128xf32>
      tpu.vector_store %arg12[%c0_27, %c0_28], %39 {strides = array<i32>} : memref<8x128xf32, #tpu.memory_space<vmem>>, vector<8x128xf32>,
    } else {
    }
    %c0 = arith.constant 0 : index
    %c0_1 = arith.constant 0 : index
    %3 = vector.load %arg12[%c0, %c0_1] : memref<8x128xf32, #tpu.memory_space<vmem>>, vector<8x128xf32>
    %4 = arith.truncf %3 : vector<8x128xf32> to vector<8x128xbf16>
    %c0_2 = arith.constant 0 : index
    %c0_3 = arith.constant 0 : index
    %5 = vector.load %arg8[%c0_2, %c0_3] : memref<128x128xbf16, #tpu.memory_space<vmem>>, vector<128x128xbf16>
    %cst = arith.constant dense<0.000000e+00> : vector<8x128xf32>
    %6 = tpu.matmul %4, %5, %cst {dimension_numbers = #tpu.dot_dimension_numbers<[1], [0], [0], [1], [0, 0, 1, 1], [], []>} : vector<8x128xbf16>, vector<128x128xbf16>, vector<8x128xf32> -> vector<8x128xf32>
    %c0_4 = arith.constant 0 : index
    %c0_5 = arith.constant 0 : index
    %7 = vector.load %arg9[%c0_4, %c0_5] : memref<1x128xf32, #tpu.memory_space<vmem>>, vector<1x128xf32>
    %8 = vector.broadcast %7 : vector<1x128xf32> to vector<8x128xf32>
    %9 = arith.addf %6, %8 : vector<8x128xf32>
    %c0_6 = arith.constant 0 : index
    %c0_7 = arith.constant 0 : index
    %10 = vector.load %arg11[%c0_6, %c0_7] : memref<8x128xf32, #tpu.memory_space<vmem>>, vector<8x128xf32>
    tpu.vector_store %arg11[%c0_6, %c0_7], %9 {strides = array<i32>} : memref<8x128xf32, #tpu.memory_space<vmem>>, vector<8x128xf32>,
    return
  }
  func.func @transform_0(%arg0: i32, %arg1: i32) -> (i32, i32) {
    %c0_i32 = arith.constant 0 : i32
    %c0_i32_0 = arith.constant 0 : i32
    return %arg0, %c0_i32 : i32, i32
  }
  func.func @transform_1(%arg0: i32, %arg1: i32) -> (i32, i32) {
    %c0_i32 = arith.constant 0 : i32
    %c0_i32_0 = arith.constant 0 : i32
    return %arg0, %c0_i32 : i32, i32
  }
  func.func @transform_2(%arg0: i32, %arg1: i32) -> (i32, i32) {
    %c0_i32 = arith.constant 0 : i32
    %c0_i32_0 = arith.constant 0 : i32
    %c0_i32_1 = arith.constant 0 : i32
    return %c0_i32, %c0_i32_0 : i32, i32
  }
  func.func @transform_3(%arg0: i32, %arg1: i32) -> (i32, i32) {
    %c0_i32 = arith.constant 0 : i32
    %c0_i32_0 = arith.constant 0 : i32
    %c0_i32_1 = arith.constant 0 : i32
    return %c0_i32, %c0_i32_0 : i32, i32
  }
  func.func @transform_4(%arg0: i32, %arg1: i32) -> (i32, i32) {
    %c0_i32 = arith.constant 0 : i32
    %c0_i32_0 = arith.constant 0 : i32
    %c0_i32_1 = arith.constant 0 : i32
    return %c0_i32, %c0_i32_0 : i32, i32
  }
  func.func @transform_5(%arg0: i32, %arg1: i32) -> (i32, i32) {
    %c0_i32 = arith.constant 0 : i32
    %c0_i32_0 = arith.constant 0 : i32
    %c0_i32_1 = arith.constant 0 : i32
    return %c0_i32, %c0_i32_0 : i32, i32
  }
  func.func @transform_6(%arg0: i32, %arg1: i32) -> (i32, i32) {
    %c0_i32 = arith.constant 0 : i32
    %c0_i32_0 = arith.constant 0 : i32
    return %c0_i32, %arg1 : i32, i32
  }
  func.func @transform_7(%arg0: i32, %arg1: i32) -> (i32, i32) {
    %c0_i32 = arith.constant 0 : i32
    %c0_i32_0 = arith.constant 0 : i32
    return %c0_i32, %arg1 : i32, i32
  }
  func.func @transform_8(%arg0: i32, %arg1: i32) -> (i32, i32) {
    %c0_i32 = arith.constant 0 : i32
    %c0_i32_0 = arith.constant 0 : i32
    return %arg0, %c0_i32 : i32, i32
  }
  func.func @transform_9(%arg0: i32, %arg1: i32) -> (i32, i32) {
    %c0_i32 = arith.constant 0 : i32
    return %arg0, %arg1 : i32, i32
  }
}

</mosaic_0001>

<bundles_post_ra>
// kernel: _lambda_.1
= control target key start
LH: loop header
LB: loop body
LE: loop exit
PB: predicated region body
PF: predicated region fallthrough
CT: control target
= control target key end

     0   :  { %15 = vsyncpa [#allocation4], 0  ;;  %s963_s0 = inlined_call_operand.vmem [shape: bf16[8,128], index: 0, kind: input, shape index: {}]   ;;  %s964_s1 = inlined_call_operand.vmem [shape: f32[8,128], index: 1, kind: input, shape index: {}]   ;;  %s965_s2 = inlined_call_operand.hbm [shape: bf16[128,384], index: 2, kind: input, shape index: {}]   ;;  %s966_s3 = inlined_call_operand.vmem [shape: f32[1,384], index: 3, kind: input, shape index: {}]   ;;  %s967_s4 = inlined_call_operand.hbm [shape: bf16[128,128], index: 4, kind: input, shape index: {}]   ;;  %s968_s5 = inlined_call_operand.vmem [shape: f32[1,128], index: 5, kind: input, shape index: {}]   ;;  %s969_s6 = inlined_call_operand.hbm [shape: bf16[128,128], index: 6, kind: input, shape index: {}]   ;;  %s970_s7 = inlined_call_operand.vmem [shape: f32[1,128], index: 7, kind: input, shape index: {}]   ;;  %s971_s8 = inlined_call_operand.vmem [shape: f32[8,1], index: 8, kind: output, shape index: {0}]   ;;  %s972_s9 = inlined_call_operand.vmem [shape: f32[8,128], index: 9, kind: output, shape index: {1}]  }
   0x1   :  { %16 = vsyncpa [#allocation6], 0  ;;  %s843_s30 = smov [#allocation5]  }
   0x2   :  { %s40_s10 = sshll.u32 %s843_s30, 4  ;;  %s41_s10 = int_to_ptr.vmem [resolvable:$true] %s40_s10 }
   0x3   :  { %s787_s11 = scalar_lea.vmem %s41_s10, 1024  ;;  %p792_p1 = scmp.lt.s32.totalorder %s41_s10, %s41_s10 }
   0x4   :  { %p788_p0 = scmp.ne.s32.totalorder %s41_s10, %s787_s11  ;;  %p793_p2 = scmp.lt.s32.totalorder %s787_s11, %s787_s11 }
   0x6   :  { %p794_p3 = por %p793_p2, %p792_p1 }
   0x8   :  { %p795_p4 = pnand %p794_p3, %p788_p0 }
   0xa   :  { %798 = shalt.err (!%p795_p4)
}
   0xb   :  { %s844_s12 = smov 64   ;;  %s845_s13 = smov 4  }
   0xc   :  { %46 = dma.hbm_to_vmem [thread:$0]  %s967_s4, 1024, %s41_s10, [#allocation6], %s844_s12, %s844_s12, %s845_s13  }
   0xd   :  { %s846_s16 = smov [#allocation3]  }
   0xe   :  { %s26_s17 = sshll.u32 %s846_s16, 4  ;;  %s27_s17 = int_to_ptr.vmem [resolvable:$true] %s26_s17 }
   0xf   :  { %s807_s18 = scalar_lea.vmem %s27_s17, 3072  ;;  %p812_p6 = scmp.lt.s32.totalorder %s27_s17, %s27_s17 }
  0x10   :  { %p808_p5 = scmp.ne.s32.totalorder %s27_s17, %s807_s18  ;;  %p813_p7 = scmp.lt.s32.totalorder %s807_s18, %s807_s18 }
  0x12   :  { %p814_p8 = por %p813_p7, %p812_p6 }
  0x14   :  { %p815_p9 = pnand %p814_p8, %p808_p5 }
  0x16   :  { %818 = shalt.err (!%p815_p9)
}
  0x17   :  { %s847_s19 = smov 192   ;;  %s848_s20 = smov 12  }
  0x18   :  { %32 = dma.hbm_to_vmem [thread:$0]  %s965_s2, 3072, %s27_s17, [#allocation4], %s847_s19, %s847_s19, %s848_s20  }
  0x19   :  { %s849_s23 = smov [#allocation7]  }
  0x1a   :  { %s54_s24 = sshll.u32 %s849_s23, 4  ;;  %s55_s24 = int_to_ptr.vmem [resolvable:$true] %s54_s24 }
  0x1b   :  { %s827_s4 = scalar_lea.vmem %s55_s24, 1024  ;;  %p832_p11 = scmp.lt.s32.totalorder %s55_s24, %s55_s24 }
  0x1c   :  { %p828_p10 = scmp.ne.s32.totalorder %s55_s24, %s827_s4  ;;  %p833_p12 = scmp.lt.s32.totalorder %s827_s4, %s827_s4 }
  0x1e   :  { %p834_p13 = por %p833_p12, %p832_p11 }
  0x20   :  { %p835_p0 = pnand %p834_p13, %p828_p10 }
  0x22   :  { %838 = shalt.err (!%p835_p0)
}
  0x23   :  { %60 = dma.hbm_to_vmem [thread:$0]  %s969_s6, 1024, %s55_s24, [#allocation6], %s844_s12, %s844_s12, %s845_s13  }
  0x24   :  { %839 = dma.done.wait [#allocation4], 3072  }
  0x25   :  { %840 = vsyncadd [#allocation4], 4294964224 }
  0x26   :  { %841 = dma.done.wait [#allocation6], 2048  }
  0x27   :  { %842 = vsyncadd [#allocation6], 4294965248  ;;  %v850_v0 = vmov 0.0   ;;  %vm851_vm0 = vmmov 0   ;;  %v852_v1 = vmov 0   ;;  %v762_v27 = vld [vmem:[#allocation7 + $0x38] sm:$0xff]   ;;  %v112_v43 = vlaneseq }
  0x28   :  { %655 = vmatprep.subr.bf16.mxu1 %v850_v0  ;;  %671 = vmatprep.mubr.msk.bf16.mxu1 %vm851_vm0, %v850_v0  ;;  %v725_v2 = vld [vmem:[#allocation3 + $0xac] ss:$12 sps:$4 sm:$0xff]   ;;  %v727_v3 = vld [vmem:[#allocation3 + $0xb0] ss:$12 sps:$4 sm:$0xff]   ;;  %v728_v4 = vld [vmem:[#allocation3 + $0xa8] ss:$12 sps:$4 sm:$0xff]  }
  0x29   :  { %287 = vmatprep.mubr.bf16.mxu0 %v852_v1  ;;  %255 = vmatprep.subr.bf16.mxu0 %v725_v2  ;;  %v729_v5 = vld [vmem:[#allocation3 + $0x94] ss:$12 sps:$4 sm:$0xff]   ;;  %v731_v6 = vld [vmem:[#allocation3 + $0x98] ss:$12 sps:$4 sm:$0xff]   ;;  %v732_v7 = vld [vmem:[#allocation3 + $0x90] ss:$12 sps:$4 sm:$0xff]  }
  0x2a   :  { %656 = vmatpush3.bf16.msra.mxu1 %v727_v3  ;;  %256 = vmatpush1.bf16.msra.mxu0 %v728_v4  ;;  %v733_v8 = vld [vmem:[#allocation3 + $0x7c] ss:$12 sps:$4 sm:$0xff]   ;;  %v735_v9 = vld [vmem:[#allocation3 + $0x80] ss:$12 sps:$4 sm:$0xff]   ;;  %v736_v10 = vld [vmem:[#allocation3 + $0x78] ss:$12 sps:$4 sm:$0xff]  }
  0x2b   :  { %657 = vmatprep.subr.bf16.mxu1 %v850_v0  ;;  %257 = vmatprep.subr.bf16.mxu0 %v729_v5  ;;  %v737_v11 = vld [vmem:[#allocation3 + $0x64] ss:$12 sps:$4 sm:$0xff]   ;;  %v739_v12 = vld [vmem:[#allocation3 + $0x68] ss:$12 sps:$4 sm:$0xff]   ;;  %v740_v13 = vld [vmem:[#allocation3 + $0x60] ss:$12 sps:$4 sm:$0xff]  }
  0x2c   :  { %v741_v14 = vld [vmem:[#allocation3 + $0x4c] ss:$12 sps:$4 sm:$0xff]   ;;  %v743_v15 = vld [vmem:[#allocation3 + $0x50] ss:$12 sps:$4 sm:$0xff]   ;;  %v744_v16 = vld [vmem:[#allocation3 + $0x48] ss:$12 sps:$4 sm:$0xff]  }
  0x2d   :  { %v745_v17 = vld [vmem:[#allocation3 + $0x34] ss:$12 sps:$4 sm:$0xff]   ;;  %v747_v18 = vld [vmem:[#allocation3 + $0x38] ss:$12 sps:$4 sm:$0xff]   ;;  %v748_v19 = vld [vmem:[#allocation3 + $0x30] ss:$12 sps:$4 sm:$0xff]  }
  0x2e   :  { %658 = vmatpush3.bf16.msra.mxu1 %v731_v6  ;;  %258 = vmatpush1.bf16.msra.mxu0 %v732_v7  ;;  %v749_v20 = vld [vmem:[#allocation3 + $0x1c] ss:$12 sps:$4 sm:$0xff]   ;;  %v751_v21 = vld [vmem:[#allocation3 + $0x20] ss:$12 sps:$4 sm:$0xff]   ;;  %v752_v22 = vld [vmem:[#allocation3 + $0x18] ss:$12 sps:$4 sm:$0xff]  }
  0x2f   :  { %659 = vmatprep.subr.bf16.mxu1 %v850_v0  ;;  %259 = vmatprep.subr.bf16.mxu0 %v733_v8  ;;  %v753_v23 = vld [vmem:[#allocation3 + $0x4] ss:$12 sps:$4 sm:$0xff]   ;;  %v755_v24 = vld [vmem:[#allocation3 + $0x8] ss:$12 sps:$4 sm:$0xff]   ;;  %v756_v25 = vld [vmem:[#allocation3] ss:$12 sps:$4 sm:$0xff]  }
  0x30   :  { %v77_v26 = vld [vmem:[%s963_s0] sm:$0xf]  ;;  %v757_v28 = vld [vmem:[#allocation5 + $0x38] sm:$0xff]   ;;  %v764_v29 = vld [vmem:[#allocation7 + $0x30] sm:$0xff]   ;;  %v113_v44 = vshrl.u32 %v112_v43, 7  ;;  %vm454_vm1 = vcmask 7168  }
  0x31   :  { %v758_v30 = vld [vmem:[#allocation5 + $0x30] sm:$0xff]   ;;  %v759_v31 = vld [vmem:[#allocation5 + $0x28] sm:$0xff]   ;;  %v760_v32 = vld [vmem:[#allocation5 + $0x20] sm:$0xff]  }
  0x32   :  { %660 = vmatpush3.bf16.msra.mxu1 %v735_v9  ;;  %260 = vmatpush1.bf16.msra.mxu0 %v736_v10  ;;  %v761_v33 = vld [vmem:[#allocation5 + $0x18] sm:$0xff]   ;;  %v763_v34 = vld [vmem:[#allocation5 + $0x10] sm:$0xff]   ;;  %v765_v35 = vld [vmem:[#allocation5 + $0x8] sm:$0xff]   ;;  %v122_v45 = vsub.s32 2, %v113_v44  ;;  %v114_v47 = vsub.s32 0, %v113_v44  ;;  %v118_v63 = vsub.s32 1, %v113_v44 }
  0x33   :  { %661 = vmatprep.subr.bf16.mxu1 %v850_v0  ;;  %261 = vmatprep.subr.bf16.mxu0 %v737_v11  ;;  %v766_v36 = vld [vmem:[#allocation7 + $0x28] sm:$0xff]   ;;  %v767_v37 = vld [vmem:[#allocation5] sm:$0xff]   ;;  %v769_v39 = vld [vmem:[#allocation7 + $0x18] sm:$0xff]  }
  0x34   :  { %v768_v38 = vld [vmem:[#allocation7 + $0x20] sm:$0xff]   ;;  %v770_v40 = vld [vmem:[#allocation7 + $0x10] sm:$0xff]   ;;  %v771_v41 = vld [vmem:[#allocation7 + $0x8] sm:$0xff]  }
  0x35   :  { %v772_v42 = vld [vmem:[#allocation7] sm:$0xff]  }
  0x36   :  { %662 = vmatpush3.bf16.msra.mxu1 %v739_v12  ;;  %262 = vmatpush1.bf16.msra.mxu0 %v740_v13  ;;  %v110_v46 = vld [vmem:[%s966_s3] sm:$0x7] }
  0x37   :  { %663 = vmatprep.subr.bf16.mxu1 %v850_v0  ;;  %263 = vmatprep.subr.bf16.mxu0 %v741_v14  ;;  %v123_v48 = vrot.slane %v110_v46, %v122_v45  ;;  %v115_v49 = vrot.slane %v110_v46, %v114_v47  ;;  %v458_v1 = vld [vmem:[%s964_s1] sm:$0xff] }
  0x38   :  { %v610_v7 = vld [vmem:[%s968_s5] ss:$0 sm:$0xff] }
  0x3a   :  { %664 = vmatpush3.bf16.msra.mxu1 %v743_v15  ;;  %264 = vmatpush1.bf16.msra.mxu0 %v744_v16  ;;  %v619_v15 = vld [vmem:[%s970_s7] ss:$0 sm:$0xff] }
  0x3b   :  { %665 = vmatprep.subr.bf16.mxu1 %v850_v0  ;;  %265 = vmatprep.subr.bf16.mxu0 %v745_v17 }
  0x3e   :  { %666 = vmatpush3.bf16.msra.mxu1 %v747_v18  ;;  %266 = vmatpush1.bf16.msra.mxu0 %v748_v19 }
  0x3f   :  { %667 = vmatprep.subr.bf16.mxu1 %v850_v0  ;;  %267 = vmatprep.subr.bf16.mxu0 %v749_v20 }
  0x42   :  { %668 = vmatpush3.bf16.msra.mxu1 %v751_v21  ;;  %268 = vmatpush1.bf16.msra.mxu0 %v752_v22 }
  0x43   :  { %669 = vmatprep.subr.bf16.mxu1 %v850_v0  ;;  %269 = vmatprep.subr.bf16.mxu0 %v753_v23 }
  0x46   :  { %670 = vmatpush3.bf16.msra.mxu1 %v755_v24  ;;  %270 = vmatpush1.bf16.msra.mxu0 %v756_v25 }
  0x47   :  { %695 = vmatprep.subr.bf16.mxu1 %v850_v0  ;;  %675 = vmatprep.subr.bf16.mxu0 %v850_v0 }
  0x49   :  { %672 = vmatmul.mubr.bf16.vlgmr.msra.gmra.mxu1 %v77_v26  ;;  %288 = vmatmul.mubr.bf16.vlgmr.msra.gmra.mxu0 %v77_v26 }
  0x4a   :  { %696 = vmatpush3.bf16.msra.mxu1 %v762_v27  ;;  %676 = vmatpush3.bf16.msra.mxu0 %v757_v28 }
  0x4b   :  { %697 = vmatprep.subr.bf16.mxu1 %v850_v0  ;;  %677 = vmatprep.subr.bf16.mxu0 %v850_v0 }
  0x4c   :  { %691 = vmatprep.mubr.msk.bf16.mxu0 %vm851_vm0, %v850_v0  ;;  %711 = vmatprep.mubr.msk.bf16.mxu1 %vm851_vm0, %v850_v0 }
  0x4e   :  { %698 = vmatpush3.bf16.msra.mxu1 %v764_v29  ;;  %678 = vmatpush3.bf16.msra.mxu0 %v758_v30 }
  0x4f   :  { %699 = vmatprep.subr.bf16.mxu1 %v850_v0  ;;  %679 = vmatprep.subr.bf16.mxu0 %v850_v0 }
  0x52   :  { %680 = vmatpush3.bf16.msra.mxu0 %v759_v31  ;;  %700 = vmatpush3.bf16.msra.mxu1 %v766_v36 }
  0x53   :  { %681 = vmatprep.subr.bf16.mxu0 %v850_v0  ;;  %701 = vmatprep.subr.bf16.mxu1 %v850_v0 }
  0x56   :  { %682 = vmatpush3.bf16.msra.mxu0 %v760_v32  ;;  %702 = vmatpush3.bf16.msra.mxu1 %v768_v38 }
  0x57   :  { %683 = vmatprep.subr.bf16.mxu0 %v850_v0  ;;  %703 = vmatprep.subr.bf16.mxu1 %v850_v0 }
  0x5a   :  { %684 = vmatpush3.bf16.msra.mxu0 %v761_v33  ;;  %704 = vmatpush3.bf16.msra.mxu1 %v769_v39 }
  0x5b   :  { %685 = vmatprep.subr.bf16.mxu0 %v850_v0  ;;  %705 = vmatprep.subr.bf16.mxu1 %v850_v0 }
  0x5e   :  { %686 = vmatpush3.bf16.msra.mxu0 %v763_v34  ;;  %706 = vmatpush3.bf16.msra.mxu1 %v770_v40 }
  0x5f   :  { %687 = vmatprep.subr.bf16.mxu0 %v850_v0  ;;  %707 = vmatprep.subr.bf16.mxu1 %v850_v0 }
  0x62   :  { %688 = vmatpush3.bf16.msra.mxu0 %v765_v35  ;;  %708 = vmatpush3.bf16.msra.mxu1 %v771_v41 }
  0x63   :  { %689 = vmatprep.subr.bf16.mxu0 %v850_v0  ;;  %709 = vmatprep.subr.bf16.mxu1 %v850_v0  ;;  %v119_v0 = vrot.slane %v110_v46, %v118_v63 }
  0x66   :  { %690 = vmatpush3.bf16.msra.mxu0 %v767_v37  ;;  %710 = vmatpush3.bf16.msra.mxu1 %v772_v42 }
 0x109   :  { %v330_v50 = vpop.f32.mrf.mxu1  ;;  %v289_v52 = vpop.f32.mrf.mxu0 }
 0x10a   :  { %v331_v51 = vadd.f32 %v330_v50, %v123_v48  ;;  %v290_v53 = vadd.f32 %v289_v52, %v115_v49 }
 0x10b   :  { %v673_v54 = vpop.f32.mrf.mxu1  ;;  %v291_v56 = vpop.f32.mrf.mxu0 }
 0x10c   :  { %v456_v55 = vmul.f32 1.442695, %v331_v51  ;;  %v336_v57 = vmax.f32 %v290_v53, 0.0  ;;  %v292_v3 = vadd.f32 %v291_v56, %v119_v0 }
 0x10d   :  { %v333_v58 = vpop.f32.mrf.mxu1  ;;  %v293_v59 = vpop.f32.mrf.mxu0 }
 0x10e   :  { %773 = vpow2.f32 %v456_v55  ;;  %v337_v60 = vpack.c.bf16 %v336_v57, %v336_v57 }
 0x10f   :  { %v674_v61 = vpop.f32.mrf.mxu1  ;;  %v294_v62 = vpop.f32.mrf.mxu0 }
 0x110   :  { %692 = vmatmul.mubr.bf16.vlgmr.msra.gmra.mxu0 %v337_v60 }
 0x11b   :  { %v774_v2 = vpop.eup %773 }
 0x11c   :  { %v459_v4 = vmul.f32 %v774_v2, %v458_v1 }
 0x11e   :  { %v460_v5 = vadd.f32 %v459_v4, %v292_v3 }
 0x120   :  { %v463_v6 = vpack.c.bf16 %v460_v5, %v460_v5 }
 0x122   :  { %712 = vmatmul.mubr.bf16.vlgmr.msra.gmra.mxu1 %v463_v6 }
 0x1d0   :  { %v443_v8 = vpop.f32.mrf.mxu0 }
 0x1d1   :  { %v444_v9 = vadd.f32 %v610_v7, %v443_v8 }
 0x1d2   :  { %v693_v10 = vpop.f32.mrf.mxu0 }
 0x1d3   :  { %v449_v11 = vsub.f32 0.0, %v444_v9 }
 0x1d4   :  { %v446_v12 = vpop.f32.mrf.mxu0 }
 0x1d5   :  { %v450_v13 = vmul.f32 1.442695, %v449_v11 }
 0x1d6   :  { %v694_v14 = vpop.f32.mrf.mxu0 }
 0x1d7   :  { %775 = vpow2.f32 %v450_v13 }
 0x1e2   :  { %v569_v16 = vpop.f32.mrf.mxu1 }
 0x1e3   :  { %v570_v17 = vadd.f32 %v619_v15, %v569_v16 }
 0x1e4   :  { %v713_v18 = vpop.f32.mrf.mxu1  ;;  %v776_v19 = vpop.eup %775 }
 0x1e5   :  { %575 = vst [vmem:[%s972_s9] sm:$0xff] %v570_v17  ;;  %v452_v20 = vadd.f32 1.0, %v776_v19 }
 0x1e6   :  { %v572_v21 = vpop.f32.mrf.mxu1 }
 0x1e7   :  { %777 = vrcp.f32 %v452_v20 }
 0x1e8   :  { %v714_v22 = vpop.f32.mrf.mxu1 }
 0x1f4   :  { %v778_v23 = vpop.eup %777 }
 0x1f5   :  { %455 = vst.msk [vmem:[%s971_s8] sm:$0xff] %vm454_vm1, %v778_v23 }
 0x1f6   :  { %584 = vsyncpa [#allocation4], 1 }
 0x1f7   :  { %585 = vsyncpa [#allocation6], 1 }

</bundles_post_ra>
